<compile_context>
chip_gen: v7x
topology: tpu7x:2x2x1
jax: 0.10.0
libtpu: 0.0.40
codegen_flags: <defaults>
</compile_context>

<pallas_src>
import functools
import math

import jax
import jax.numpy as jnp
from jax.experimental import pallas as pl
from jax.experimental.pallas import tpu as pltpu


def _round_up(x, m):
    return ((x + m - 1) // m) * m


def _cdiv(a, b):
    return (a + b - 1) // b


# --------------------------- stage 1: gamma/beta ---------------------------
# Tiny per-batch kernel: the two k=3 Conv1d chains fused into two fat matmuls.

def bsft_gamma_beta_kernel(band_ref, ws_ref, bs_ref, wgb_ref, bgb_ref,
                           gamma_ref, beta_ref):
    # band_ref : (1, 2, F)
    # ws_ref   : (nhidden, 6)        bs_ref : (nhidden, 1)
    # wgb_ref  : (2C, 3*nhidden)     bgb_ref: (2C, 1)
    # gamma_ref/beta_ref : (1, C, F)
    band = band_ref[0]                                         # (2, F)
    F_len = band.shape[-1]
    C = gamma_ref.shape[1]

    # mlp_shared: Conv1d(2 -> nhidden, k=3, pad=1) as ONE matmul.
    zpad2 = jnp.zeros((band.shape[0], 1), band.dtype)
    band_pad = jnp.concatenate([zpad2, band, zpad2], axis=-1)   # (2, F+2)
    band_stack = jnp.concatenate(
        [band_pad[:, k:k + F_len] for k in range(3)], axis=0)   # (6, F)
    actv = jnp.dot(ws_ref[...], band_stack,
                   preferred_element_type=jnp.float32) + bs_ref[...]   # (nh, F)
    actv = actv * jax.nn.sigmoid(actv)                          # SiLU

    # mlp_gamma + mlp_beta: fused Conv1d(nhidden -> 2C, k=3, pad=1).
    zpadh = jnp.zeros((actv.shape[0], 1), actv.dtype)
    actv_pad = jnp.concatenate([zpadh, actv, zpadh], axis=-1)   # (nh, F+2)
    actv_stack = jnp.concatenate(
        [actv_pad[:, k:k + F_len] for k in range(3)], axis=0)   # (3*nh, F)
    gb = jnp.dot(wgb_ref[...], actv_stack,
                 preferred_element_type=jnp.float32) + bgb_ref[...]    # (2C, F)

    gamma_ref[0] = gb[:C].astype(gamma_ref.dtype)
    beta_ref[0] = gb[C:].astype(beta_ref.dtype)


# --------------------------- stage 2: FiLM (+ReLU) stream ---------------------------

def film_kernel(gamma_ref, beta_ref, x_ref, out_ref, *, apply_relu):
    # gamma_ref/beta_ref : (1, c_tile, F)     x_ref/out_ref : (1, c_tile, F, t_tile)
    g = gamma_ref[0].astype(jnp.float32)                        # (c_tile, F)
    b = beta_ref[0].astype(jnp.float32)
    x = x_ref[0].astype(jnp.float32)                            # (c_tile, F, t_tile)
    y = x * (1.0 + g)[:, :, None] + b[:, :, None]
    if apply_relu:
        y = jnp.maximum(y, 0.0)
    out_ref[0] = y.astype(out_ref.dtype)


def _vmem_limit_bytes():
    """Generation-aware scoped VMEM limit: half of physical, capped at 64 MiB."""
    try:
        cap = int(getattr(pltpu.get_tpu_info(), "vmem_capacity_bytes", 0))
    except Exception:
        cap = 0
    if cap <= 0:
        cap = 64 * 1024 * 1024      # conservative fallback (v7x physical)
    return min(64 * 1024 * 1024, cap // 2)


def _pick_tiles(B, C, F, T, x_esize, vmem_limit_bytes):
    """Pick (c_tile, t_tile) from the total pipeline VMEM footprint, not per-block size.

    Footprint model: 2 pipeline buffers x (x block + out block) plus 2 x 2 buffers of the
    (lane/sublane padded) gamma/beta blocks, kept under 75% of the scoped VMEM limit.
    """
    budget = (vmem_limit_bytes * 3) // 4
    F8 = _round_up(F, 8)          # sublane padding of the x/out blocks
    F128 = _round_up(F, 128)      # lane padding of the gamma/beta blocks

    def fits(c_t, t_t):
        xo = 2 * 2 * c_t * F8 * _round_up(t_t, 128) * x_esize
        gb = 2 * 2 * _round_up(c_t, 8) * F128 * 4
        return xo + gb <= budget

    # T tile: full extent if T <= 128, otherwise any multiple of 128 (cdiv grid with a
    # masked boundary tile, so it need not divide T).  Prefer the largest.
    if T <= 128:
        t_cands = [T]
    else:
        t_cands = ([T] if T % 128 == 0 else []) + list(range((T // 128) * 128, 0, -128))
        seen = set()
        t_cands = [t for t in t_cands if not (t in seen or seen.add(t))]

    # C tile: full C, or a multiple-of-8 divisor (sublane constraint of the
    # (1, c_tile, F) gamma/beta blocks).  Prefer the largest.
    c_cands = [C] + [c for c in range((C // 8) * 8, 0, -8) if c < C and C % c == 0]

    c_tile, t_tile = c_cands[-1], t_cands[-1]
    done = False
    for c_t in c_cands:
        for t_t in t_cands:
            if fits(c_t, t_t):
                c_tile, t_tile = c_t, t_t
                done = True
                break
        if done:
            break

    # v7x has 2 TensorCores: guarantee >= 2 parallel grid points when the shapes allow.
    if B * _cdiv(C, c_tile) * _cdiv(T, t_tile) < 2:
        if T > 128:
            t_tile = _round_up(_cdiv(T, 2), 128)
        elif len(c_cands) > 1:
            c_tile = c_cands[1]
    return c_tile, t_tile


def bsft_forward(x, band, params, *, apply_relu=True, vmem_limit_bytes=None):
    """x: (B, C, F, T) float32/bfloat16, band: (B, 2, F) float32."""
    ws, bs, wg, bg, wb, bb = params
    B, C, F, T = x.shape
    nhidden = ws.shape[0]
    f32 = jnp.float32
    if vmem_limit_bytes is None:
        vmem_limit_bytes = _vmem_limit_bytes()

    # Glue: weight re-layout only (tiny tensors, no x movement).
    ws_flat = jnp.concatenate([ws[:, :, k] for k in range(3)], axis=1).astype(f32)
    wgb_flat = jnp.concatenate(
        [jnp.concatenate([wg[:, :, k] for k in range(3)], axis=1),
         jnp.concatenate([wb[:, :, k] for k in range(3)], axis=1)],
        axis=0).astype(f32)                                    # (2C, 3*nhidden)
    bs_c = bs.reshape(nhidden, 1).astype(f32)
    bgb_c = jnp.concatenate([bg, bb]).reshape(2 * C, 1).astype(f32)

    # ---- stage 1: per-batch gamma/beta (microscopic MXU work) -------------
    gamma, beta = pl.pallas_call(
        bsft_gamma_beta_kernel,
        out_shape=(jax.ShapeDtypeStruct((B, C, F), f32),
                   jax.ShapeDtypeStruct((B, C, F), f32)),
        grid_spec=pltpu.PrefetchScalarGridSpec(
            num_scalar_prefetch=0,
            grid=(B,),
            in_specs=[
                pl.BlockSpec((1, 2, F), lambda b: (b, 0, 0)),           # band
                pl.BlockSpec((nhidden, 6), lambda b: (0, 0)),           # shared W
                pl.BlockSpec((nhidden, 1), lambda b: (0, 0)),           # shared b
                pl.BlockSpec((2 * C, 3 * nhidden), lambda b: (0, 0)),   # gamma|beta W
                pl.BlockSpec((2 * C, 1), lambda b: (0, 0)),             # gamma|beta b
            ],
            out_specs=[
                pl.BlockSpec((1, C, F), lambda b: (b, 0, 0)),
                pl.BlockSpec((1, C, F), lambda b: (b, 0, 0)),
            ],
        ),
        compiler_params=pltpu.CompilerParams(
            dimension_semantics=("parallel",)),
    )(band, ws_flat, bs_c, wgb_flat, bgb_c)

    # ---- stage 2: streaming FiLM (+ReLU) over native-layout x --------------
    c_tile, t_tile = _pick_tiles(B, C, F, T, x.dtype.itemsize, vmem_limit_bytes)
    grid = (B, _cdiv(C, c_tile), _cdiv(T, t_tile))

    out = pl.pallas_call(
        functools.partial(film_kernel, apply_relu=apply_relu),
        out_shape=jax.ShapeDtypeStruct((B, C, F, T), x.dtype),
        grid_spec=pltpu.PrefetchScalarGridSpec(
            num_scalar_prefetch=0,
            grid=grid,
            in_specs=[
                pl.BlockSpec((1, c_tile, F), lambda b, c, t: (b, c, 0)),   # gamma
                pl.BlockSpec((1, c_tile, F), lambda b, c, t: (b, c, 0)),   # beta
                pl.BlockSpec((1, c_tile, F, t_tile),
                             lambda b, c, t: (b, c, 0, t)),                # x
            ],
            out_specs=pl.BlockSpec((1, c_tile, F, t_tile),
                                   lambda b, c, t: (b, c, 0, t)),
        ),
        compiler_params=pltpu.CompilerParams(
            dimension_semantics=("parallel", "parallel", "parallel"),
            vmem_limit_bytes=vmem_limit_bytes),
    )(gamma, beta, x)
    return out


# ------------------------- reference / setup -------------------------------

def conv1d_ref(x, w, b):
    """Plain-JAX Conv1d(k=3, pad=1) reference. x:(B,Ci,L) w:(Co,Ci,3) b:(Co,)."""
    L = x.shape[-1]
    xp = jnp.pad(x, ((0, 0), (0, 0), (1, 1)))
    out = jnp.zeros((x.shape[0], w.shape[0], L), jnp.float32)
    for k in range(3):
        out = out + jnp.einsum('oi,bil->bol', w[:, :, k], xp[:, :, k:k + L])
    return out + b[None, :, None]


def bsft_ref(x, band, params):
    ws, bs, wg, bg, wb, bb = params
    actv = jax.nn.silu(conv1d_ref(band, ws, bs))
    gamma = conv1d_ref(actv, wg, bg)[..., None]
    beta = conv1d_ref(actv, wb, bb)[..., None]
    return x * (1.0 + gamma) + beta


def make_params(key, nhidden, out_channels):
    ks = jax.random.split(key, 6)
    ws = jax.random.normal(ks[0], (nhidden, 2, 3), jnp.float32) * (
        1.0 / math.sqrt(2 * 3))
    bs = jax.random.normal(ks[1], (nhidden,), jnp.float32) * 0.1
    std = math.sqrt(2.0 / (nhidden * 3))
    wg = jax.random.normal(ks[2], (out_channels, nhidden, 3), jnp.float32) * std
    bg = jax.random.normal(ks[3], (out_channels,), jnp.float32) * 0.1
    wb = jax.random.normal(ks[4], (out_channels, nhidden, 3), jnp.float32) * std
    bb = jax.random.normal(ks[5], (out_channels,), jnp.float32) * 0.1
    return ws, bs, wg, bg, wb, bb


# TODO(synk): torch.stft / torch.istft (FFT) stages of FourierUnit have no Pallas
# equivalent; they remain outside the kernel (jnp.fft in XLA) and are not exercised here.

if __name__ == "__main__":
    key = jax.random.PRNGKey(0)

    # Check 1: module-implied small shapes. x = (B, 2*out_channels, F, T), band = (B, 2, F).
    B, C, nhidden, F, T = 2, 4, 32, 16, 8
    kx, kb, kp, k2 = jax.random.split(key, 4)
    x = jax.random.normal(kx, (B, C, F, T), jnp.float32)
    band = jax.random.normal(kb, (B, 2, F), jnp.float32)
    params = make_params(kp, nhidden, C)

    out = jax.block_until_ready(bsft_forward(x, band, params, apply_relu=True))
    ref = jnp.maximum(bsft_ref(x, band, params), 0.0)
    assert out.shape == (B, C, F, T)
    assert jnp.allclose(out, ref, atol=1e-4, rtol=1e-4), "mismatch vs reference"

    # Check 2: masked-boundary / multi-tile path — T not a multiple of 128, odd F, and a
    # small VMEM budget to force T tiling (cdiv grid with a masked last tile).
    B2, C2, F2, T2 = 1, 8, 33, 1000
    kx2, kb2, kp2 = jax.random.split(k2, 3)
    x2 = jax.random.normal(kx2, (B2, C2, F2, T2), jnp.float32)
    band2 = jax.random.normal(kb2, (B2, 2, F2), jnp.float32)
    params2 = make_params(kp2, nhidden, C2)

    out2 = jax.block_until_ready(
        bsft_forward(x2, band2, params2, apply_relu=True,
                     vmem_limit_bytes=4 * 1024 * 1024))
    ref2 = jnp.maximum(bsft_ref(x2, band2, params2), 0.0)
    assert jnp.allclose(out2, ref2, atol=1e-4, rtol=1e-4), "mismatch vs reference (tiled)"

    print("KERNEL_OK")
</pallas_src>

<mosaic_0001>
module attributes {stable_mosaic.version = 11 : i64} {
  func.func @bsft_gamma_beta_kernel(%arg0: i32, %arg1: memref<1x2x16xf32, #tpu.memory_space<vmem>>, %arg2: memref<32x6xf32, #tpu.memory_space<vmem>>, %arg3: memref<32x1xf32, #tpu.memory_space<vmem>>, %arg4: memref<8x96xf32, #tpu.memory_space<vmem>>, %arg5: memref<8x1xf32, #tpu.memory_space<vmem>>, %arg6: memref<1x4x16xf32, #tpu.memory_space<vmem>>, %arg7: memref<1x4x16xf32, #tpu.memory_space<vmem>>) attributes {dimension_semantics = [#tpu.dimension_semantics<parallel>], iteration_bounds = array<i64: 2>, scalar_prefetch = 0 : i64, scratch_operands = 0 : i64, tpu.core_type = #tpu.core_type<tc>, window_params = [{transform_indices = @transform_0, window_bounds = array<i64: 1, 2, 16>}, {pipeline_mode = #tpu.pipeline_mode<synchronous>, transform_indices = @transform_1, window_bounds = array<i64: 32, 6>}, {pipeline_mode = #tpu.pipeline_mode<synchronous>, transform_indices = @transform_2, window_bounds = array<i64: 32, 1>}, {pipeline_mode = #tpu.pipeline_mode<synchronous>, transform_indices = @transform_3, window_bounds = array<i64: 8, 96>}, {pipeline_mode = #tpu.pipeline_mode<synchronous>, transform_indices = @transform_4, window_bounds = array<i64: 8, 1>}, {transform_indices = @transform_5, window_bounds = array<i64: 1, 4, 16>}, {transform_indices = @transform_6, window_bounds = array<i64: 1, 4, 16>}]} {
    %c0 = arith.constant 0 : index
    %c0_0 = arith.constant 0 : index
    %c0_1 = arith.constant 0 : index
    %0 = vector.load %arg1[%c0, %c0_0, %c0_1] : memref<1x2x16xf32, #tpu.memory_space<vmem>>, vector<1x2x16xf32>
    %1 = vector.shape_cast %0 : vector<1x2x16xf32> to vector<2x16xf32>
    %cst = arith.constant 0.000000e+00 : f32
    %2 = vector.broadcast %cst : f32 to vector<2x1xf32>
    %3 = tpu.concatenate %2, %1, %2 in 1 : vector<2x1xf32>, vector<2x16xf32>, vector<2x1xf32> -> vector<2x18xf32>
    %4 = vector.extract_strided_slice %3 {offsets = [0, 0], sizes = [2, 16], strides = [1, 1]} : vector<2x18xf32> to vector<2x16xf32>
    %5 = vector.extract_strided_slice %3 {offsets = [0, 1], sizes = [2, 16], strides = [1, 1]} : vector<2x18xf32> to vector<2x16xf32>
    %6 = vector.extract_strided_slice %3 {offsets = [0, 2], sizes = [2, 16], strides = [1, 1]} : vector<2x18xf32> to vector<2x16xf32>
    %7 = tpu.concatenate %4, %5, %6 in 0 : vector<2x16xf32>, vector<2x16xf32>, vector<2x16xf32> -> vector<6x16xf32>
    %c0_2 = arith.constant 0 : index
    %c0_3 = arith.constant 0 : index
    %8 = vector.load %arg2[%c0_2, %c0_3] : memref<32x6xf32, #tpu.memory_space<vmem>>, vector<32x6xf32>
    %cst_4 = arith.constant dense<0.000000e+00> : vector<32x16xf32>
    %9 = tpu.matmul %8, %7, %cst_4 {dimension_numbers = #tpu.dot_dimension_numbers<[1], [0], [0], [1], [0, 0, 1, 1], [], []>} : vector<32x6xf32>, vector<6x16xf32>, vector<32x16xf32> -> vector<32x16xf32>
    %c0_5 = arith.constant 0 : index
    %c0_6 = arith.constant 0 : index
    %10 = vector.load %arg3[%c0_5, %c0_6] : memref<32x1xf32, #tpu.memory_space<vmem>>, vector<32x1xf32>
    %11 = vector.broadcast %10 : vector<32x1xf32> to vector<32x16xf32>
    %12 = arith.addf %9, %11 : vector<32x16xf32>
    %13 = arith.negf %12 : vector<32x16xf32>
    %14 = math.exp %13 : vector<32x16xf32>
    %cst_7 = arith.constant 1.000000e+00 : f32
    %15 = vector.broadcast %cst_7 : f32 to vector<32x16xf32>
    %16 = arith.addf %15, %14 : vector<32x16xf32>
    %17 = arith.divf %15, %16 : vector<32x16xf32>
    %18 = arith.mulf %12, %17 : vector<32x16xf32>
    %cst_8 = arith.constant 0.000000e+00 : f32
    %19 = vector.broadcast %cst_8 : f32 to vector<32x1xf32>
    %20 = tpu.concatenate %19, %18, %19 in 1 : vector<32x1xf32>, vector<32x16xf32>, vector<32x1xf32> -> vector<32x18xf32>
    %21 = vector.extract_strided_slice %20 {offsets = [0, 0], sizes = [32, 16], strides = [1, 1]} : vector<32x18xf32> to vector<32x16xf32>
    %22 = vector.extract_strided_slice %20 {offsets = [0, 1], sizes = [32, 16], strides = [1, 1]} : vector<32x18xf32> to vector<32x16xf32>
    %23 = vector.extract_strided_slice %20 {offsets = [0, 2], sizes = [32, 16], strides = [1, 1]} : vector<32x18xf32> to vector<32x16xf32>
    %24 = tpu.concatenate %21, %22, %23 in 0 : vector<32x16xf32>, vector<32x16xf32>, vector<32x16xf32> -> vector<96x16xf32>
    %c0_9 = arith.constant 0 : index
    %c0_10 = arith.constant 0 : index
    %25 = vector.load %arg4[%c0_9, %c0_10] : memref<8x96xf32, #tpu.memory_space<vmem>>, vector<8x96xf32>
    %cst_11 = arith.constant dense<0.000000e+00> : vector<8x16xf32>
    %26 = tpu.matmul %25, %24, %cst_11 {dimension_numbers = #tpu.dot_dimension_numbers<[1], [0], [0], [1], [0, 0, 1, 1], [], []>} : vector<8x96xf32>, vector<96x16xf32>, vector<8x16xf32> -> vector<8x16xf32>
    %c0_12 = arith.constant 0 : index
    %c0_13 = arith.constant 0 : index
    %27 = vector.load %arg5[%c0_12, %c0_13] : memref<8x1xf32, #tpu.memory_space<vmem>>, vector<8x1xf32>
    %28 = vector.broadcast %27 : vector<8x1xf32> to vector<8x16xf32>
    %29 = arith.addf %26, %28 : vector<8x16xf32>
    %30 = vector.extract_strided_slice %29 {offsets = [0, 0], sizes = [4, 16], strides = [1, 1]} : vector<8x16xf32> to vector<4x16xf32>
    %c0_14 = arith.constant 0 : index
    %c0_15 = arith.constant 0 : index
    %c0_16 = arith.constant 0 : index
    %31 = vector.load %arg6[%c0_14, %c0_15, %c0_16] : memref<1x4x16xf32, #tpu.memory_space<vmem>>, vector<1x4x16xf32>
    %32 = vector.shape_cast %31 : vector<1x4x16xf32> to vector<4x16xf32>
    %33 = vector.shape_cast %30 : vector<4x16xf32> to vector<1x4x16xf32>
    tpu.vector_store %arg6[%c0_14, %c0_15, %c0_16], %33 {strides = array<i32>} : memref<1x4x16xf32, #tpu.memory_space<vmem>>, vector<1x4x16xf32>,
    %34 = vector.extract_strided_slice %29 {offsets = [4, 0], sizes = [4, 16], strides = [1, 1]} : vector<8x16xf32> to vector<4x16xf32>
    %c0_17 = arith.constant 0 : index
    %c0_18 = arith.constant 0 : index
    %c0_19 = arith.constant 0 : index
    %35 = vector.load %arg7[%c0_17, %c0_18, %c0_19] : memref<1x4x16xf32, #tpu.memory_space<vmem>>, vector<1x4x16xf32>
    %36 = vector.shape_cast %35 : vector<1x4x16xf32> to vector<4x16xf32>
    %37 = vector.shape_cast %34 : vector<4x16xf32> to vector<1x4x16xf32>
    tpu.vector_store %arg7[%c0_17, %c0_18, %c0_19], %37 {strides = array<i32>} : memref<1x4x16xf32, #tpu.memory_space<vmem>>, vector<1x4x16xf32>,
    return
  }
  func.func @transform_0(%arg0: i32) -> (i32, i32, i32) {
    %c0_i32 = arith.constant 0 : i32
    %c0_i32_0 = arith.constant 0 : i32
    %c0_i32_1 = arith.constant 0 : i32
    return %arg0, %c0_i32, %c0_i32_0 : i32, i32, i32
  }
  func.func @transform_1(%arg0: i32) -> (i32, i32) {
    %c0_i32 = arith.constant 0 : i32
    %c0_i32_0 = arith.constant 0 : i32
    %c0_i32_1 = arith.constant 0 : i32
    return %c0_i32, %c0_i32_0 : i32, i32
  }
  func.func @transform_2(%arg0: i32) -> (i32, i32) {
    %c0_i32 = arith.constant 0 : i32
    %c0_i32_0 = arith.constant 0 : i32
    %c0_i32_1 = arith.constant 0 : i32
    return %c0_i32, %c0_i32_0 : i32, i32
  }
  func.func @transform_3(%arg0: i32) -> (i32, i32) {
    %c0_i32 = arith.constant 0 : i32
    %c0_i32_0 = arith.constant 0 : i32
    %c0_i32_1 = arith.constant 0 : i32
    return %c0_i32, %c0_i32_0 : i32, i32
  }
  func.func @transform_4(%arg0: i32) -> (i32, i32) {
    %c0_i32 = arith.constant 0 : i32
    %c0_i32_0 = arith.constant 0 : i32
    %c0_i32_1 = arith.constant 0 : i32
    return %c0_i32, %c0_i32_0 : i32, i32
  }
  func.func @transform_5(%arg0: i32) -> (i32, i32, i32) {
    %c0_i32 = arith.constant 0 : i32
    %c0_i32_0 = arith.constant 0 : i32
    %c0_i32_1 = arith.constant 0 : i32
    return %arg0, %c0_i32, %c0_i32_0 : i32, i32, i32
  }
  func.func @transform_6(%arg0: i32) -> (i32, i32, i32) {
    %c0_i32 = arith.constant 0 : i32
    %c0_i32_0 = arith.constant 0 : i32
    %c0_i32_1 = arith.constant 0 : i32
    return %arg0, %c0_i32, %c0_i32_0 : i32, i32, i32
  }
}

</mosaic_0001>

<bundles_post_ra>
// kernel: tpu_custom_call.1
= control target key start
LH: loop header
LB: loop body
LE: loop exit
PB: predicated region body
PF: predicated region fallthrough
CT: control target
= control target key end

     0   :  { %12 = vsyncpa [#allocation3], 0  ;;  %s1239_s0 = inlined_call_operand.vmem [shape: f32[2,2,16], index: 0, kind: input, shape index: {}]   ;;  %s1240_s1 = inlined_call_operand.vmem [shape: f32[32,6], index: 1, kind: input, shape index: {}]   ;;  %s1241_s2 = inlined_call_operand.vmem [shape: f32[32,1], index: 2, kind: input, shape index: {}]   ;;  %s1242_s3 = inlined_call_operand.vmem [shape: f32[8,96], index: 3, kind: input, shape index: {}]   ;;  %s1243_s4 = inlined_call_operand.vmem [shape: f32[8,1], index: 4, kind: input, shape index: {}]   ;;  %s1244_s5 = inlined_call_operand.hbm [shape: f32[2,4,16], index: 5, kind: output, shape index: {0}]   ;;  %s1245_s6 = inlined_call_operand.hbm [shape: f32[2,4,16], index: 6, kind: output, shape index: {1}]  }
   0x1   :  { %14 = vsyncpa [#allocation3 + $0x1], 0 }
   0x2   :  { %15 = vsyncpa [#allocation5], 0 }
   0x3   :  { %17 = vsyncpa [#allocation5 + $0x1], 0  ;;  %s1037_s21 = smov 0   ;;  %s1039_s22 = smov 0  }
   0x4   :  { %s1041_s23 = smov 0   ;;  %s1043_s24 = smov 0  }
   0x5 LB: > { %s1058_s25 = sadd.s32 4294967295, %s991_s24   ;;  %s698_s26 = sadd.s32 4294967294, %s991_s24   ;;  %s991_s24 = sphi %s1043_s24, %s1253_s24   ;;  %s987_s23 = sphi %s1041_s23, %s1252_s23   ;;  %s983_s22 = sphi %s1039_s22, %s1251_s22   ;;  %s979_s21 = sphi %s1037_s21, %s1250_s21  }
   0x6   : > { %s1062_s27 = sadd.s32 1, %s991_s24   ;;  %s140_s28 = sadd.s32 1, %s987_s23 }
   0x7   : > { %s137_s29 = ssub.s32 %s991_s24, %s1062_s27  ;;  %p150_p0 = scmp.ne.s32.totalorder %s987_s23, %s983_s22 }
   0x8   : > { %p138_p1 = scmp.eq.s32.totalorder %s137_s29, 0  ;;  %p151_p2 = scmp.eq.s32.totalorder %s1058_s25, 1 }
   0x9   : > { %p156_p3 = scmp.ne.s32.totalorder %s983_s22, %s979_s21  ;;  %p157_p4 = scmp.eq.s32.totalorder %s698_s26, 1 }
   0xa   : > { %s1073_s30 = scalar_select %p138_p1, %s987_s23, %s140_s28  }
   0xb   : > { %p1075_p5 = por %p151_p2, %p150_p0  ;;  %p1079_p6 = por %p157_p4, %p156_p3 }
   0xc   : > { %p701_p7 = scmp.ge.s32.totalorder %s991_s24, 1  ;;  %p220_p8 = scmp.lt.s32.totalorder %s991_s24, 3 }
   0xe   : > { %p221_p9 = pnand %p701_p7, %p220_p8 }
   0xf   : > { %p254_p10 = scmp.lt.s32.totalorder (!%p221_p9), %s1058_s25, 1  ;;  %s993_s14 = smov (!%p221_p9), 1   ;;  %v280_v1 = vld [vmem:[%s1240_s1] sm:$0xff] (!%p221_p9)  ;;  %vm308_vm0 = vcmask (!%p221_p9), 48128   ;;  %vm263_vm1 = vcmask (!%p221_p9), 7168   ;;  %vm265_vm2 = vcmask (!%p221_p9), 138240  }
  0x10   : > { %224 = sbr.rel (%p221_p9) target bundleno = 1018 (0x3fa), region = 40  ;;  %745 = vmatprep.mubr.msk.f32.mxu0 (!%p221_p9), %vm308_vm0, %v280_v1  ;;  %v994_v4 = vmov (!%p221_p9), 0   ;;  %s995_s17 = smov (!%p221_p9), 126   ;;  %v284_v8 = vld [vmem:[%s1241_s2] sm:$0xff] (!%p221_p9)  ;;  %v285_v9 = vld [vmem:[%s1241_s2 + $0x8] sm:$0xff] (!%p221_p9)  ;;  %v286_v10 = vld [vmem:[%s1241_s2 + $0x10] sm:$0xff] (!%p221_p9) }
  0x11   : > { %849 = vset.pattern.permute.xlu1 (!%p221_p9), %v994_v4  ;;  %850 = vset.pattern.permute.xlu0 (!%p221_p9), %v994_v4  ;;  %s996_s18 = smov (!%p221_p9), 127   ;;  %v287_v11 = vld [vmem:[%s1241_s2 + $0x18] sm:$0xff] (!%p221_p9)  ;;  %vm276_vm3 = vcmask (!%p221_p9), 1041408   ;;  %vm278_vm4 = vcmask (!%p221_p9), 1043456   ;;  %vm321_vm5 = vcmask (!%p221_p9), 1045504   ;;  %v281_v16 = vld [vmem:[%s1240_s1 + $0x8] sm:$0xff] (!%p221_p9)  ;;  %vm1130_vm6 = vmpackc.low (!%p221_p9), %vm265_vm2, %vm265_vm2 }
  0x12   : > { %v282_v17 = vld [vmem:[%s1240_s1 + $0x10] sm:$0xff] (!%p221_p9)  ;;  %v283_v18 = vld [vmem:[%s1240_s1 + $0x18] sm:$0xff] (!%p221_p9)  ;;  %v997_v43 = vmov (!%p221_p9), 0.0|0.0   ;;  %vm998_vm7 = vmmov (!%p221_p9), 0   ;;  %vm497_vm8 = vcmask (!%p221_p9), 785408   ;;  %s1160_s28 = sand.u32 (!%p221_p9), 1, %s983_s22  }
  0x13   : > { %778 = vmatprep.subr.bf16.mxu1 (!%p221_p9), %v997_v43  ;;  %s702_s29 = sshll.u32 (!%p221_p9), %s1160_s28, 2  ;;  %vm571_vm9 = vcmask (!%p221_p9), 125952   ;;  %vm573_vm10 = vcmask (!%p221_p9), 130052   ;;  %s576_s26 = scalar_lea.sflag (!%p221_p9), [#allocation3], %s1160_s28 }
  0x14   : > { %s253_s12 = scalar_lea.vmem (!%p221_p9), [#allocation4], %s702_s29 }
  0x17   : > { %s255_s9 = scalar_select %p254_p10, %s1058_s25, 1 }
  0x19   : > { %s704_s10 = sshll.u32 %s255_s9, 1  ;;  %s721_s9 = sshll.u32 %s1058_s25, 6 }
  0x1a   : > { %s257_s13 = scalar_lea.vmem %s1239_s0, %s704_s10  ;;  %s246_s10 = scalar_lea.vmem [#allocation2], %s702_s29 }
  0x1b   : > { %v258_v0 = vld [vmem:[%s257_s13] sm:$0x3]  ;;  %s594_s11 = sshll.u32 %s246_s10, 4  ;;  %s607_s13 = sshll.u32 %s253_s12, 4  ;;  %s1169_s11 = int_to_ptr.vmem [resolvable:$true] %s594_s11  ;;  %s1176_s13 = int_to_ptr.vmem [resolvable:$true] %s607_s13 }
  0x1c   : > { %260 = vrot.lane.b32.xlu0 %v258_v0, %s993_s14  ;;  %s1167_s19 = scalar_lea.hbm %s1244_s5, %s721_s9 }
  0x8e   : > { %v261_v2 = vpop.permute.xlu0 %260 }
  0x8f   : > { %v264_v3 = vsel %vm263_vm1, 0.0, %v261_v2 }
  0x90   : > { %v266_v5 = vsel %vm265_vm2, %v264_v3, 0.0 }
  0x91   : > { %v268_v6 = vrot.slane %v266_v5, 6  ;;  %v272_v7 = vrot.slane %v266_v5, 4 }
  0x93   : > { %273 = vrot.lane.b32.xlu1 %v272_v7, %s995_s17  ;;  %269 = vrot.lane.b32.xlu0 %v268_v6, %s996_s18 }
  0x97   : > { %290 = vperm.xlu1 %849, %v284_v8   ;;  %295 = vperm.xlu0 %850, %v285_v9   ;;  %v491_v9 = vld [vmem:[%s1243_s4] sm:$0xff] }
  0x9b   : > { %300 = vperm.xlu1 %849, %v286_v10   ;;  %v999_v10 = vmov 0.0  }
  0x9c   : > { %775 = vmatprep.mubr.msk.f32.mxu1 %vm998_vm7, %v999_v10 }
  0x9f   : > { %305 = vperm.xlu1 %849, %v287_v11  }
 0x105   : > { %v274_v12 = vpop.permute.xlu1 %273  ;;  %v270_v13 = vpop.permute.xlu0 %269 }
 0x106   : > { %v277_v14 = vsel %vm276_vm3, %v266_v5, %v270_v13 }
 0x107   : > { %v279_v15 = vsel %vm278_vm4, %v277_v14, %v274_v12 }
 0x108   : > { %743 = vmatprep.subr.msk.mxu0 %vm321_vm5, %v279_v15 }
 0x109   : > { %744 = vmatpush3.msk.msra.mxu0 %vm321_vm5, %v279_v15 }
 0x10a   : > { %746 = vmatmul.mubr.msk.f32.vlgmr.msra.gmra.mrb[0].mxu0 %vm308_vm0, %v281_v16 }
 0x10b   : > { %748 = vmatprep.mubr.msk.f32.mxu0 %vm308_vm0, %v282_v17 }
 0x10e   : > { %749 = vmatmul.mubr.msk.f32.gmra.mrb[2].mxu0 %vm308_vm0, %v283_v18 }
 0x116   : > { %v291_v19 = vpop.permute.xlu1 %290  ;;  %v296_v21 = vpop.permute.xlu0 %295 }
 0x11a   : > { %v301_v20 = vpop.permute.xlu1 %300 }
 0x11e   : > { %v306_v27 = vpop.permute.xlu1 %305 }
 0x1dd   : > { %v747_v22 = vpop.f32.mrb[0].mxu0 }
 0x1de   : > { %v397_v23 = vadd.f32 %v747_v22, %v296_v21  ;;  %v391_v24 = vpop.f32.mrb[1].mxu0 }
 0x1df   : > { %v392_v25 = vadd.f32 %v391_v24, %v291_v19 }
 0x1e0   : > { %v711_v26 = vmul.f32 -1.442695, %v397_v23 }
 0x1e1   : > { %v710_v28 = vmul.f32 -1.442695, %v392_v25  ;;  %v750_v29 = vpop.f32.mrb[2].mxu0 }
 0x1e2   : > { %881 = vpow2.f32 %v711_v26  ;;  %v407_v30 = vadd.f32 %v750_v29, %v306_v27  ;;  %v401_v31 = vpop.f32.mrb[3].mxu0  ;;  %v490_v27 = vld [vmem:[%s1242_s3] sm:$0xff] }
 0x1e3   : > { %883 = vpow2.f32 %v710_v28  ;;  %v402_v32 = vadd.f32 %v401_v31, %v301_v20 }
 0x1e4   : > { %v713_v33 = vmul.f32 -1.442695, %v407_v30 }
 0x1e5   : > { %v712_v34 = vmul.f32 -1.442695, %v402_v32 }
 0x1e6   : > { %885 = vpow2.f32 %v713_v33 }
 0x1e7   : > { %887 = vpow2.f32 %v712_v34 }
 0x1ec   : > { %v882_v35 = vpop.eup %881 }
 0x1ed   : > { %v884_v36 = vpop.eup %883  ;;  %v423_v37 = vadd.f32 1.0, %v882_v35 }
 0x1ee   : > { %v422_v38 = vadd.f32 1.0, %v884_v36 }
 0x1ef   : > { %889 = vrcp.f32 %v423_v37 }
 0x1f0   : > { %v886_v39 = vpop.eup %885  ;;  %891 = vrcp.f32 %v422_v38 }
 0x1f1   : > { %v888_v40 = vpop.eup %887  ;;  %v425_v41 = vadd.f32 1.0, %v886_v39 }
 0x1f2   : > { %v424_v42 = vadd.f32 1.0, %v888_v40 }
 0x1f3   : > { %893 = vrcp.f32 %v425_v41 }
 0x1f4   : > { %895 = vrcp.f32 %v424_v42 }
 0x1f9   : > { %v890_v44 = vpop.eup %889 }
 0x1fa   : > { %v892_v45 = vpop.eup %891  ;;  %v435_v46 = vmul.f32 %v890_v44, %v397_v23 }
 0x1fb   : > { %v434_v47 = vmul.f32 %v892_v45, %v392_v25 }
 0x1fd   : > { %v894_v48 = vpop.eup %893  ;;  %v851_v49 = vpack.i.bf16 %v435_v46, %v434_v47 }
 0x1fe   : > { %v896_v50 = vpop.eup %895  ;;  %v437_v51 = vmul.f32 %v894_v48, %v407_v30 }
 0x1ff   : > { %v436_v52 = vmul.f32 %v896_v50, %v402_v32  ;;  %852 = vrot.lane.b32.xlu0 %v851_v49, %s993_s14 }
 0x201   : > { %v856_v53 = vpack.i.bf16 %v437_v51, %v436_v52 }
 0x203   : > { %857 = vrot.lane.b32.xlu1 %v856_v53, %s993_s14  ;;  %s1174_s14 = scalar_lea.hbm %s1245_s6, %s721_s9 }
 0x271   : > { %v853_v54 = vpop.permute.xlu0 %852 }
 0x272   : > { %v855_v55 = vunpack.i.h.bf16 %v853_v54  ;;  %v854_v56 = vunpack.i.l.bf16 %v853_v54 }
 0x274   : > { %v455_v57 = vsel %vm263_vm1, 0.0, %v855_v55  ;;  %v454_v58 = vsel %vm263_vm1, 0.0, %v854_v56 }
 0x275   : > { %v459_v60 = vsel %vm265_vm2, %v455_v57, 0.0  ;;  %v458_v61 = vsel %vm265_vm2, %v454_v58, 0.0  ;;  %v858_v62 = vpop.permute.xlu1 %857  ;;  %v779_v63 = vpack.c.bf16 %v455_v57, %v454_v58 }
 0x276   : > { %v860_v0 = vunpack.i.h.bf16 %v858_v62  ;;  %v859_v1 = vunpack.i.l.bf16 %v858_v62  ;;  %v861_v2 = vpack.i.bf16 %v459_v60, %v458_v61 }
 0x277   : > { %781 = vmatpush3.bf16.msk.msra.mxu1 %vm1130_vm6, %v779_v63 }
 0x278   : > { %v457_v3 = vsel %vm263_vm1, 0.0, %v860_v0  ;;  %v456_v4 = vsel %vm263_vm1, 0.0, %v859_v1  ;;  %862 = vrot.lane.b32.xlu0 %v861_v2, %s996_s18  ;;  %782 = vmatprep.subr.bf16.mxu1 %v997_v43 }
 0x279   : > { %v461_v5 = vsel %vm265_vm2, %v457_v3, 0.0  ;;  %v460_v6 = vsel %vm265_vm2, %v456_v4, 0.0  ;;  %v783_v7 = vpack.c.bf16 %v457_v3, %v456_v4 }
 0x27a   : > { %v866_v8 = vpack.i.bf16 %v461_v5, %v460_v6 }
 0x27b   : > { %785 = vmatpush3.bf16.msk.msra.mxu1 %vm1130_vm6, %v783_v7 }
 0x27c   : > { %867 = vrot.lane.b32.xlu1 %v866_v8, %s996_s18  ;;  %872 = vrot.lane.b32.xlu0 %v861_v2, %s995_s17  ;;  %s1000_s18 = smov [#allocation2]  }
 0x27d   : > { %786 = vmatprep.subr.bf16.mxu1 %v997_v43  ;;  %s901_s29 = sshll.u32 %s1000_s18, 4  ;;  %s902_s29 = int_to_ptr.vmem [resolvable:$false] %s901_s29 }
 0x27e   : > { %s903_s15 = scalar_lea.vmem %s902_s29, 128  ;;  %p904_p0 = scmp.lt.s32.totalorder %s1169_s11, %s902_s29 }
 0x280   : > { %877 = vrot.lane.b32.xlu1 %v866_v8, %s995_s17  ;;  %494 = vperm.xlu0 %850, %v491_v9   ;;  %s897_s17 = scalar_lea.vmem %s1169_s11, 64 }
 0x281   : > { %p898_p11 = scmp.ne.s32.totalorder %s1169_s11, %s897_s17  ;;  %p905_p1 = scmp.lt.s32.totalorder %s903_s15, %s897_s17 }
 0x283   : > { %p899_p12 = pnand %p898_p11, %p1075_p5  ;;  %p906_p2 = por %p905_p1, %p904_p0 }
 0x285   : > { %p900_p13 = pneg %p899_p12 }
 0x287   : > { %p907_p3 = pnand %p906_p2, %p900_p13 }
 0x2ea   : > { %v863_v11 = vpop.permute.xlu0 %862 }
 0x2eb   : > { %v865_v12 = vunpack.i.h.bf16 %v863_v11  ;;  %v864_v13 = vunpack.i.l.bf16 %v863_v11 }
 0x2ed   : > { %v787_v14 = vpack.c.bf16 %v865_v12, %v864_v13 }
 0x2ee   : > { %v868_v15 = vpop.permute.xlu1 %867  ;;  %v873_v16 = vpop.permute.xlu0 %872 }
 0x2ef   : > { %v870_v17 = vunpack.i.h.bf16 %v868_v15  ;;  %v869_v18 = vunpack.i.l.bf16 %v868_v15  ;;  %788 = vmatpush3.bf16.msra.mxu1 %v787_v14  ;;  %v875_v20 = vunpack.i.h.bf16 %v873_v16  ;;  %v874_v21 = vunpack.i.l.bf16 %v873_v16 }
 0x2f0   : > { %789 = vmatprep.subr.bf16.mxu1 %v997_v43 }
 0x2f1   : > { %v790_v19 = vpack.c.bf16 %v870_v17, %v869_v18  ;;  %v793_v23 = vpack.c.bf16 %v875_v20, %v874_v21 }
 0x2f2   : > { %v878_v22 = vpop.permute.xlu1 %877 }
 0x2f3   : > { %791 = vmatpush3.bf16.msra.mxu1 %v790_v19  ;;  %v880_v24 = vunpack.i.h.bf16 %v878_v22  ;;  %v879_v25 = vunpack.i.l.bf16 %v878_v22 }
 0x2f4   : > { %792 = vmatprep.subr.bf16.mxu1 %v997_v43 }
 0x2f5   : > { %v796_v26 = vpack.c.bf16 %v880_v24, %v879_v25 }
 0x2f7   : > { %794 = vmatpush3.bf16.msra.mxu1 %v793_v23 }
 0x2f8   : > { %795 = vmatprep.subr.bf16.mxu1 %v997_v43 }
 0x2fb   : > { %797 = vmatpush3.bf16.msra.mxu1 %v796_v26 }
 0x2fe   : > { %776 = vmatmul.mubr.msk.f32.vlgmr.msra.gmra.mrb[0].mxu1 %vm497_vm8, %v490_v27 }
 0x2ff   : > { %v495_v28 = vpop.permute.xlu0 %494 }
 0x3d1   : > { %v567_v29 = vpop.f32.mrb[0].mxu1 }
 0x3d2   : > { %v568_v30 = vadd.f32 %v567_v29, %v495_v28  ;;  %v777_v31 = vpop.f32.mrb[1].mxu1 }
 0x3d4   : > { %572 = vst.msk [vmem:[%s246_s10] sm:$0xf] %vm571_vm9, %v568_v30 }
 0x3d5   : > { %574 = vst.msk [vmem:[%s253_s12 - $0x4] sm:$0xf0] %vm573_vm10, %v568_v30 }
 0x3d6   : > { %910 = shalt.err (!%p907_p3)
}
 0x3d7   : > { %s911_s9 = scalar_lea.hbm %s1167_s19, 64  ;;  %s915_s16 = scalar_lea.hbm %s1244_s5, 128 }
 0x3d8   : > { %p912_p4 = scmp.ne.s32.totalorder %s1167_s19, %s911_s9  ;;  %p916_p9 = scmp.lt.u32.totalorder %s1167_s19, %s1244_s5 }
 0x3d9   : > { %p917_p10 = scmp.lt.u32.totalorder %s915_s16, %s911_s9  ;;  %p919_p12 = scmp.lt.u32.totalorder %s911_s9, %s1167_s19 }
 0x3da   : > { %p913_p7 = pnand %p912_p4, %p1075_p5 }
 0x3db   : > { %p918_p11 = por %p917_p10, %p916_p9 }
 0x3dc   : > { %p914_p8 = pneg %p913_p7 }
 0x3dd   : > { %p920_p13 = por %p919_p12, %p918_p11 }
 0x3df   : > { %p921_p0 = pnand %p920_p13, %p914_p8 }
 0x3e1   : > { %924 = shalt.err (!%p921_p0)
}
 0x3e2   : > { %798 = dma.vmem_to_hbm [thread:$0]  (%p1075_p5), %s1169_s11, 64, %s1167_s19, %s576_s26  }
 0x3e3   : > { %s581_s17 = scalar_lea.sflag [#allocation5], %s1160_s28  ;;  %s925_s18 = scalar_lea.vmem %s1176_s13, 64 }
 0x3e4   : > { %p926_p1 = scmp.ne.s32.totalorder %s1176_s13, %s925_s18  ;;  %s1001_s29 = smov [#allocation4]  }
 0x3e5   : > { %s929_s15 = sshll.u32 %s1001_s29, 4  ;;  %s930_s15 = int_to_ptr.vmem [resolvable:$false] %s929_s15 }
 0x3e6   : > { %p927_p2 = pnand %p926_p1, %p1075_p5  ;;  %s931_s9 = scalar_lea.vmem %s930_s15, 128 }
 0x3e7   : > { %p932_p4 = scmp.lt.s32.totalorder %s1176_s13, %s930_s15  ;;  %p933_p7 = scmp.lt.s32.totalorder %s931_s9, %s925_s18 }
 0x3e8   : > { %p928_p3 = pneg %p927_p2 }
 0x3e9   : > { %p934_p8 = por %p933_p7, %p932_p4 }
 0x3eb   : > { %p935_p9 = pnand %p934_p8, %p928_p3 }
 0x3ed   : > { %938 = shalt.err (!%p935_p9)
}
 0x3ee   : > { %s939_s28 = scalar_lea.hbm %s1174_s14, 64  ;;  %s943_s26 = scalar_lea.hbm %s1245_s6, 128 }
 0x3ef   : > { %p940_p10 = scmp.ne.s32.totalorder %s1174_s14, %s939_s28  ;;  %p944_p13 = scmp.lt.u32.totalorder %s1174_s14, %s1245_s6 }
 0x3f0   : > { %p945_p0 = scmp.lt.u32.totalorder %s943_s26, %s939_s28  ;;  %p947_p2 = scmp.lt.u32.totalorder %s939_s28, %s1174_s14 }
 0x3f1   : > { %p941_p11 = pnand %p940_p10, %p1075_p5 }
 0x3f2   : > { %p946_p1 = por %p945_p0, %p944_p13 }
 0x3f3   : > { %p942_p12 = pneg %p941_p11 }
 0x3f4   : > { %p948_p3 = por %p947_p2, %p946_p1 }
 0x3f6   : > { %p949_p4 = pnand %p948_p3, %p942_p12 }
 0x3f8   : > { %952 = shalt.err (!%p949_p4)
}
 0x3f9   : > { %799 = dma.vmem_to_hbm [thread:$0]  (%p1075_p5), %s1176_s13, 64, %s1174_s14, %s581_s17  }
 0x3fa PF: > { %p809_p7 = scmp.ge.s32.totalorder %s991_s24, 2  ;;  %s619_s16 = sand.u32 1, %s979_s21  }
 0x3fb   : > { %s620_s25 = scalar_lea.sflag [#allocation3], %s619_s16 }
 0x3fc   : > { %p803_p8 = pnand %p809_p7, %p1079_p6 }
 0x3fe   : > { %970 = dma.done.wait (!%p803_p8), %s620_s25, 64  }
 0x3ff   : > { %972 = vsyncadd (!%p803_p8), %s620_s25, 4294967232  ;;  %s629_s20 = scalar_lea.sflag [#allocation5], %s619_s16 }
 0x400   : > { %974 = dma.done.wait (!%p803_p8), %s629_s20, 64  }
 0x401   : > { %976 = vsyncadd (!%p803_p8), %s629_s20, 4294967232  ;;  %p20_p5 = scmp.ge.s32.totalorder %s1062_s27, 4   ;;  %s1250_s21 = smov %s983_s22 }
 0x402   : > { %s1251_s22 = smov %s987_s23  ;;  %s1252_s23 = smov %s1073_s30 }
 0x403   : > { %s1253_s24 = smov %s1062_s27  ;;  %22 = sbr.rel (!%p20_p5) target bundleno = 5 (0x5), region = 92 }
 0x40a   :  { %634 = vsyncpa [#allocation3], 1 }
 0x40b   :  { %636 = vsyncpa [#allocation3 + $0x1], 1 }
 0x40c   :  { %637 = vsyncpa [#allocation5], 1 }
 0x40d   :  { %639 = vsyncpa [#allocation5 + $0x1], 1 }

</bundles_post_ra>
